<compile_context>
chip_gen: v7x
topology: tpu7x:2x2x1
jax: 0.10.0
libtpu: 0.0.40
codegen_flags: <defaults>
</compile_context>

<pallas_src>
import functools

import numpy as np
import jax
import jax.numpy as jnp
from jax import lax
from jax.experimental import pallas as pl
from jax.experimental.pallas import tpu as pltpu

_PIX = 128          # pixels per packed row (lane width)
_INNER_CHUNK = 512  # rows per in-kernel compute chunk (keeps temporaries small)


def _make_kernel(chunk_rows: int):
    """Kernel over a (R, 384) block; bf16_3x weighted sum -> (R, 128)."""

    def kernel(x_ref, w_hi_ref, w_lo_ref, o_ref):
        n_chunks = x_ref.shape[0] // chunk_rows

        def compute(r0, rows):
            # Split x into hi/lo bf16 parts (bf16_3x == Precision.HIGH).
            x = x_ref[pl.ds(r0, rows), :].astype(jnp.float32)
            x_hi = x.astype(jnp.bfloat16)
            x_lo = (x - x_hi.astype(jnp.float32)).astype(jnp.bfloat16)
            w_hi = w_hi_ref[...]
            w_lo = w_lo_ref[...]
            acc = jnp.dot(x_hi, w_hi, preferred_element_type=jnp.float32)
            acc = acc + jnp.dot(x_lo, w_hi, preferred_element_type=jnp.float32)
            acc = acc + jnp.dot(x_hi, w_lo, preferred_element_type=jnp.float32)
            o_ref[pl.ds(r0, rows), :] = acc.astype(o_ref.dtype)

        if n_chunks <= 1:
            compute(0, x_ref.shape[0])
        else:
            def body(i, carry):
                r0 = pl.multiple_of(i * chunk_rows, chunk_rows)
                compute(r0, chunk_rows)
                return carry

            lax.fori_loop(0, n_chunks, body, 0)

    return kernel


@functools.lru_cache(maxsize=8)
def _weight_matrices(c2g_tuple):
    """W (384,128) with W[3*p + c, p] = c2g[c]; returned as (hi, lo) bf16."""
    w = np.zeros((3 * _PIX, _PIX), dtype=np.float32)
    p = np.arange(_PIX)
    for c, val in enumerate(c2g_tuple):
        w[3 * p + c, p] = np.float32(val)
    w_hi = w.astype(jnp.bfloat16)
    w_lo = (w - w_hi.astype(np.float32)).astype(jnp.bfloat16)
    return w_hi, w_lo


def _sublane_multiple(dtype) -> int:
    itemsize = np.dtype(dtype).itemsize
    return int(8 * max(1, 4 // itemsize))   # 8 f32, 16 bf16, 32 int8/fp8


def to_gray_gt(img: jax.Array, c2g_vec, *, block_rows: int = 4096) -> jax.Array:
    """Pallas equivalent of ToGrayGT.forward: img @ c2g_vec.

    img: float array of shape (..., 3), channels-last
    c2g_vec: (3, 1) buffer (concrete values, as registered in the module)
    returns: array of shape (..., 1)
    """
    assert img.shape[-1] == 3
    lead_shape = img.shape[:-1]
    M = int(np.prod(lead_shape)) if lead_shape else 1
    out_dtype = img.dtype

    c2g_np = np.asarray(c2g_vec, dtype=np.float32).reshape(3)

    # Layout-preserving flatten: interleaved RGB stream (no transpose/copy).
    flat = img.reshape(-1)                       # (M * 3,)
    m_main = (M // _PIX) * _PIX                  # pixels handled by the kernel
    m_rows = m_main // _PIX

    pieces = []

    if m_rows > 0:
        x = flat[: m_main * 3].reshape(m_rows, 3 * _PIX)   # (m_rows, 384)

        # Block rows: dtype-packed sublane multiple; keep >= 2 grid steps when
        # there is enough work (v7x megacore: both TensorCores get a share).
        sub = _sublane_multiple(img.dtype)
        R = max(sub, (int(block_rows) // sub) * sub)
        rows_ceil = ((m_rows + sub - 1) // sub) * sub
        half_rows = ((((m_rows + 1) // 2) + sub - 1) // sub) * sub
        R = min(R, max(sub, half_rows))
        R = min(R, rows_ceil)

        # Inner compute chunk (must divide R).
        C = _INNER_CHUNK if (R > _INNER_CHUNK and R % _INNER_CHUNK == 0) else R

        w_hi_np, w_lo_np = _weight_matrices(tuple(float(v) for v in c2g_np))
        w_hi = jnp.asarray(w_hi_np)
        w_lo = jnp.asarray(w_lo_np)

        in_bytes = np.dtype(img.dtype).itemsize
        out_bytes = np.dtype(out_dtype).itemsize
        cost = pl.CostEstimate(
            flops=int(6 * m_main),
            transcendentals=0,
            bytes_accessed=int(m_main * (3 * in_bytes + out_bytes)),
        )

        grid = (pl.cdiv(m_rows, R),)
        out_main = pl.pallas_call(
            _make_kernel(C),
            out_shape=jax.ShapeDtypeStruct((m_rows, _PIX), out_dtype),
            grid=grid,
            in_specs=[
                # Pixel rows, tiled along the row axis; partial tail is masked.
                pl.BlockSpec((R, 3 * _PIX), lambda i: (i, 0)),
                # Weight matrices: constant block index => DMA'd once, reused.
                pl.BlockSpec((3 * _PIX, _PIX), lambda i: (0, 0)),
                pl.BlockSpec((3 * _PIX, _PIX), lambda i: (0, 0)),
            ],
            out_specs=pl.BlockSpec((R, _PIX), lambda i: (i, 0)),
            compiler_params=pltpu.CompilerParams(
                dimension_semantics=("parallel",),
                vmem_limit_bytes=40 * 1024 * 1024,
            ),
            cost_estimate=cost,
        )(x, w_hi, w_lo)
        pieces.append(out_main.reshape(-1))

    if m_main != M:
        # <128-pixel remainder: exact f32 elementwise sum in plain XLA
        # (avoids a full-array pad copy in front of the mem-bound kernel).
        tail = flat[m_main * 3:].reshape(-1, 3).astype(jnp.float32)
        tail_out = (tail[:, 0] * c2g_np[0]
                    + tail[:, 1] * c2g_np[1]
                    + tail[:, 2] * c2g_np[2]).astype(out_dtype)
        pieces.append(tail_out)

    grey = pieces[0] if len(pieces) == 1 else jnp.concatenate(pieces)
    return grey.reshape(lead_shape + (1,))


if __name__ == "__main__":
    # Registered buffer from the PyTorch module.
    c2g_vec = jnp.array([0.2989, 0.587, 0.114], dtype=jnp.float32).reshape(-1, 1)

    key = jax.random.PRNGKey(0)
    k1, k2, k3 = jax.random.split(key, 3)

    def _ref(img):
        c = np.array([0.2989, 0.587, 0.114], dtype=np.float32)
        a = np.asarray(img, dtype=np.float32)
        return a[..., 0:1] * c[0] + a[..., 1:2] * c[1] + a[..., 2:3] * c[2]

    # bf16_3x residual is ~2^-16 relative (worst case); use a tolerance with
    # comfortable margin while still far below 8-bit image quantization.
    RTOL, ATOL = 1e-4, 1e-5

    # Case 1: small batch, pixel count a multiple of 128 (kernel-only path).
    img1 = jax.random.uniform(k1, (2, 16, 16, 3), dtype=jnp.float32)
    grey1 = jax.block_until_ready(to_gray_gt(img1, c2g_vec))
    assert grey1.shape == (2, 16, 16, 1)
    np.testing.assert_allclose(np.asarray(grey1), _ref(img1), rtol=RTOL, atol=ATOL)

    # Case 2: ragged pixel count (kernel main path + exact-f32 XLA tail).
    img2 = jax.random.uniform(k2, (2, 13, 40, 3), dtype=jnp.float32)
    grey2 = jax.block_until_ready(to_gray_gt(img2, c2g_vec))
    assert grey2.shape == (2, 13, 40, 1)
    np.testing.assert_allclose(np.asarray(grey2), _ref(img2), rtol=RTOL, atol=ATOL)

    # Case 3: image-sized input — exercises the 2-step grid (megacore split)
    # and the chunked in-kernel fori_loop path.
    img3 = jax.random.uniform(k3, (1, 512, 512, 3), dtype=jnp.float32)
    grey3 = jax.block_until_ready(to_gray_gt(img3, c2g_vec))
    assert grey3.shape == (1, 512, 512, 1)
    np.testing.assert_allclose(np.asarray(grey3), _ref(img3), rtol=RTOL, atol=ATOL)

    print("KERNEL_OK")
</pallas_src>

<mosaic_0001>
module attributes {stable_mosaic.version = 11 : i64} {
  func.func @kernel(%arg0: i32, %arg1: memref<8x384xf32, #tpu.memory_space<vmem>>, %arg2: memref<384x128xbf16, #tpu.memory_space<vmem>>, %arg3: memref<384x128xbf16, #tpu.memory_space<vmem>>, %arg4: memref<8x128xf32, #tpu.memory_space<vmem>>) attributes {dimension_semantics = [#tpu.dimension_semantics<parallel>], iteration_bounds = array<i64: 1>, scalar_prefetch = 0 : i64, scratch_operands = 0 : i64, tpu.core_type = #tpu.core_type<tc>, window_params = [{transform_indices = @transform_0, window_bounds = array<i64: 8, 384>}, {pipeline_mode = #tpu.pipeline_mode<synchronous>, transform_indices = @transform_1, window_bounds = array<i64: 384, 128>}, {pipeline_mode = #tpu.pipeline_mode<synchronous>, transform_indices = @transform_2, window_bounds = array<i64: 384, 128>}, {transform_indices = @transform_3, window_bounds = array<i64: 8, 128>}]} {
    %c0 = arith.constant 0 : index
    %c0_0 = arith.constant 0 : index
    %0 = vector.load %arg1[%c0, %c0_0] : memref<8x384xf32, #tpu.memory_space<vmem>>, vector<8x384xf32>
    %1 = arith.truncf %0 : vector<8x384xf32> to vector<8x384xbf16>
    %2 = arith.extf %1 : vector<8x384xbf16> to vector<8x384xf32>
    %3 = arith.subf %0, %2 : vector<8x384xf32>
    %4 = arith.truncf %3 : vector<8x384xf32> to vector<8x384xbf16>
    %c0_1 = arith.constant 0 : index
    %c0_2 = arith.constant 0 : index
    %5 = vector.load %arg2[%c0_1, %c0_2] : memref<384x128xbf16, #tpu.memory_space<vmem>>, vector<384x128xbf16>
    %c0_3 = arith.constant 0 : index
    %c0_4 = arith.constant 0 : index
    %6 = vector.load %arg3[%c0_3, %c0_4] : memref<384x128xbf16, #tpu.memory_space<vmem>>, vector<384x128xbf16>
    %cst = arith.constant dense<0.000000e+00> : vector<8x128xf32>
    %7 = tpu.matmul %1, %5, %cst {dimension_numbers = #tpu.dot_dimension_numbers<[1], [0], [0], [1], [0, 0, 1, 1], [], []>} : vector<8x384xbf16>, vector<384x128xbf16>, vector<8x128xf32> -> vector<8x128xf32>
    %cst_5 = arith.constant dense<0.000000e+00> : vector<8x128xf32>
    %8 = tpu.matmul %4, %5, %cst_5 {dimension_numbers = #tpu.dot_dimension_numbers<[1], [0], [0], [1], [0, 0, 1, 1], [], []>} : vector<8x384xbf16>, vector<384x128xbf16>, vector<8x128xf32> -> vector<8x128xf32>
    %9 = arith.addf %7, %8 : vector<8x128xf32>
    %cst_6 = arith.constant dense<0.000000e+00> : vector<8x128xf32>
    %10 = tpu.matmul %1, %6, %cst_6 {dimension_numbers = #tpu.dot_dimension_numbers<[1], [0], [0], [1], [0, 0, 1, 1], [], []>} : vector<8x384xbf16>, vector<384x128xbf16>, vector<8x128xf32> -> vector<8x128xf32>
    %11 = arith.addf %9, %10 : vector<8x128xf32>
    %c0_7 = arith.constant 0 : index
    %c0_8 = arith.constant 0 : index
    %12 = vector.load %arg4[%c0_7, %c0_8] : memref<8x128xf32, #tpu.memory_space<vmem>>, vector<8x128xf32>
    tpu.vector_store %arg4[%c0_7, %c0_8], %11 {strides = array<i32>} : memref<8x128xf32, #tpu.memory_space<vmem>>, vector<8x128xf32>,
    return
  }
  func.func @transform_0(%arg0: i32) -> (i32, i32) {
    %c0_i32 = arith.constant 0 : i32
    %c0_i32_0 = arith.constant 0 : i32
    return %arg0, %c0_i32 : i32, i32
  }
  func.func @transform_1(%arg0: i32) -> (i32, i32) {
    %c0_i32 = arith.constant 0 : i32
    %c0_i32_0 = arith.constant 0 : i32
    %c0_i32_1 = arith.constant 0 : i32
    return %c0_i32, %c0_i32_0 : i32, i32
  }
  func.func @transform_2(%arg0: i32) -> (i32, i32) {
    %c0_i32 = arith.constant 0 : i32
    %c0_i32_0 = arith.constant 0 : i32
    %c0_i32_1 = arith.constant 0 : i32
    return %c0_i32, %c0_i32_0 : i32, i32
  }
  func.func @transform_3(%arg0: i32) -> (i32, i32) {
    %c0_i32 = arith.constant 0 : i32
    %c0_i32_0 = arith.constant 0 : i32
    return %arg0, %c0_i32 : i32, i32
  }
}

</mosaic_0001>

<bundles_post_ra>
// kernel: tpu_custom_call.1
= control target key start
LH: loop header
LB: loop body
LE: loop exit
PB: predicated region body
PF: predicated region fallthrough
CT: control target
= control target key end

     0   :  { %8 = vsyncpa [#allocation3], 0  ;;  %s1334_s0 = inlined_call_operand.hbm [shape: f32[4,384], index: 0, kind: input, shape index: {}]   ;;  %s1335_s1 = inlined_call_operand.hbm [shape: bf16[384,128], index: 1, kind: input, shape index: {}]   ;;  %s1336_s2 = inlined_call_operand.hbm [shape: bf16[384,128], index: 2, kind: input, shape index: {}]   ;;  %s1337_s3 = inlined_call_operand.hbm [shape: f32[4,128], index: 3, kind: output, shape index: {}]  }
   0x1   :  { %9 = vsyncpa [#allocation6], 0 }
   0x2   :  { %10 = vsyncpa [#allocation4], 0 }
   0x3   :  { %15 = vsyncadd [#allocation3], 192  ;;  %s1114_s12 = smov [#allocation5]   ;;  %s1020_s16 = scalar_lea.hbm %s1335_s1, 3072 }
   0x4   :  { %s28_s13 = sshll.u32 %s1114_s12, 4  ;;  %p1021_p0 = scmp.ne.s32.totalorder %s1335_s1, %s1020_s16  ;;  %s29_s13 = int_to_ptr.vmem [resolvable:$true] %s28_s13 }
   0x5   :  { %p1024_p1 = scmp.lt.u32.totalorder %s1020_s16, %s1335_s1 }
   0x7   :  { %p1026_p2 = pnand %p1024_p1, %p1021_p0 }
   0x9   :  { %1029 = shalt.err (!%p1026_p2)
}
   0xa   :  { %s1030_s21 = scalar_lea.vmem %s29_s13, 3072  ;;  %p1035_p4 = scmp.lt.s32.totalorder %s29_s13, %s29_s13 }
   0xb   :  { %p1031_p3 = scmp.ne.s32.totalorder %s29_s13, %s1030_s21  ;;  %p1036_p5 = scmp.lt.s32.totalorder %s1030_s21, %s1030_s21 }
   0xd   :  { %p1037_p6 = por %p1036_p5, %p1035_p4 }
   0xf   :  { %p1038_p7 = pnand %p1037_p6, %p1031_p3 }
  0x11   :  { %1041 = shalt.err (!%p1038_p7)
}
  0x12   :  { %s1115_s22 = smov 64   ;;  %s1116_s23 = smov 4  }
  0x13   :  { %34 = dma.hbm_to_vmem [thread:$0]  %s1335_s1, 3072, %s29_s13, [#allocation6], %s1115_s22, %s1115_s22, %s1116_s23  }
  0x14   :  { %s1117_s26 = smov [#allocation2]   ;;  %s1042_s30 = scalar_lea.hbm %s1334_s0, 192 }
  0x15   :  { %s16_s27 = sshll.u32 %s1117_s26, 4  ;;  %p1043_p8 = scmp.ne.s32.totalorder %s1334_s0, %s1042_s30  ;;  %s17_s27 = int_to_ptr.vmem [resolvable:$true] %s16_s27 }
  0x16   :  { %p1046_p9 = scmp.lt.u32.totalorder %s1042_s30, %s1334_s0 }
  0x18   :  { %p1048_p10 = pnand %p1046_p9, %p1043_p8 }
  0x1a   :  { %1051 = shalt.err (!%p1048_p10)
}
  0x1b   :  { %s1052_s8 = scalar_lea.vmem %s17_s27, 192  ;;  %s1056_s1 = scalar_lea.vmem %s17_s27, 384 }
  0x1c   :  { %p1053_p11 = scmp.ne.s32.totalorder %s17_s27, %s1052_s8  ;;  %p1057_p12 = scmp.lt.s32.totalorder %s17_s27, %s17_s27 }
  0x1d   :  { %p1058_p13 = scmp.lt.s32.totalorder %s1056_s1, %s1052_s8 }
  0x1f   :  { %p1059_p0 = por %p1058_p13, %p1057_p12 }
  0x21   :  { %p1060_p1 = pnand %p1059_p0, %p1053_p11 }
  0x23   :  { %1063 = shalt.err (!%p1060_p1)
}
  0x24   :  { %s1118_s9 = smov 192   ;;  %s1119_s10 = smov 12  }
  0x25   :  { %22 = dma.hbm_to_vmem [thread:$0]  %s1334_s0, 192, %s17_s27, [#allocation3], %s1118_s9, %s1118_s9, %s1119_s10  }
  0x26   :  { %s1120_s13 = smov [#allocation7]   ;;  %s1064_s17 = scalar_lea.hbm %s1336_s2, 3072 }
  0x27   :  { %s40_s14 = sshll.u32 %s1120_s13, 4  ;;  %p1065_p2 = scmp.ne.s32.totalorder %s1336_s2, %s1064_s17  ;;  %s41_s14 = int_to_ptr.vmem [resolvable:$true] %s40_s14 }
  0x28   :  { %p1068_p3 = scmp.lt.u32.totalorder %s1064_s17, %s1336_s2 }
  0x2a   :  { %p1070_p4 = pnand %p1068_p3, %p1065_p2 }
  0x2c   :  { %1073 = shalt.err (!%p1070_p4)
}
  0x2d   :  { %s1074_s24 = scalar_lea.vmem %s41_s14, 3072  ;;  %p1079_p6 = scmp.lt.s32.totalorder %s41_s14, %s41_s14 }
  0x2e   :  { %p1075_p5 = scmp.ne.s32.totalorder %s41_s14, %s1074_s24  ;;  %p1080_p7 = scmp.lt.s32.totalorder %s1074_s24, %s1074_s24 }
  0x30   :  { %p1081_p8 = por %p1080_p7, %p1079_p6 }
  0x32   :  { %p1082_p9 = pnand %p1081_p8, %p1075_p5 }
  0x34   :  { %1085 = shalt.err (!%p1082_p9)
}
  0x35   :  { %46 = dma.hbm_to_vmem [thread:$0]  %s1336_s2, 3072, %s41_s14, [#allocation6], %s1115_s22, %s1115_s22, %s1116_s23  }
  0x36   :  { %1108 = dma.done.wait [#allocation3], 384  }
  0x37   :  { %1109 = vsyncadd [#allocation3], 4294966912 }
  0x38   :  { %1110 = dma.done.wait [#allocation6], 6144  }
  0x39   :  { %1111 = vsyncadd [#allocation6], 4294961152  ;;  %v1121_v0 = vmov 0.0   ;;  %vm1122_vm0 = vmmov 0   ;;  %v1189_v1 = vld [vmem:[#allocation5 + $0x40] sm:$0xff]   ;;  %v1197_v4 = vld [vmem:[#allocation5 + $0x48] sm:$0xff]  }
  0x3a   :  { %888 = vmatprep.subr.bf16.mxu1 %v1121_v0  ;;  %904 = vmatprep.mubr.msk.bf16.mxu1 %vm1122_vm0, %v1121_v0  ;;  %v1191_v2 = vld [vmem:[#allocation5 + $0x80] sm:$0xff]   ;;  %v1201_v5 = vld [vmem:[#allocation5 + $0x88] sm:$0xff]   ;;  %v1206_v7 = vld [vmem:[#allocation5 + $0x50] sm:$0xff]  }
  0x3b   :  { %795 = vmatprep.subr.bf16.mxu0 %v1189_v1  ;;  %v1194_v3 = vld [vmem:[#allocation5] sm:$0xff]   ;;  %889 = vmatpush3.bf16.msra.mxu1 %v1191_v2  ;;  %v1204_v6 = vld [vmem:[#allocation5 + $0x8] sm:$0xff]   ;;  %v1209_v8 = vld [vmem:[#allocation5 + $0x90] sm:$0xff]  }
  0x3c   :  { %796 = vmatpush3.bf16.msra.mxu0 %v1194_v3  ;;  %890 = vmatprep.subr.bf16.mxu1 %v1121_v0  ;;  %v1213_v9 = vld [vmem:[#allocation5 + $0x10] sm:$0xff]   ;;  %v1216_v10 = vld [vmem:[#allocation5 + $0x58] sm:$0xff]   ;;  %v1226_v13 = vld [vmem:[#allocation5 + $0x60] sm:$0xff]  }
  0x3d   :  { %797 = vmatprep.subr.bf16.mxu0 %v1197_v4  ;;  %v1219_v11 = vld [vmem:[#allocation5 + $0x98] sm:$0xff]   ;;  %v1229_v14 = vld [vmem:[#allocation5 + $0xa0] sm:$0xff]   ;;  %v1236_v16 = vld [vmem:[#allocation5 + $0x68] sm:$0xff]  }
  0x3e   :  { %v1223_v12 = vld [vmem:[#allocation5 + $0x18] sm:$0xff]   ;;  %v1233_v15 = vld [vmem:[#allocation5 + $0x20] sm:$0xff]   ;;  %v1238_v17 = vld [vmem:[#allocation5 + $0xa8] sm:$0xff]  }
  0x3f   :  { %891 = vmatpush3.bf16.msra.mxu1 %v1201_v5  ;;  %v1241_v18 = vld [vmem:[#allocation5 + $0x28] sm:$0xff]   ;;  %v1245_v19 = vld [vmem:[#allocation5 + $0x70] sm:$0xff]   ;;  %v1253_v22 = vld [vmem:[#allocation5 + $0x78] sm:$0xff]  }
  0x40   :  { %798 = vmatpush3.bf16.msra.mxu0 %v1204_v6  ;;  %892 = vmatprep.subr.bf16.mxu1 %v1121_v0  ;;  %v1248_v20 = vld [vmem:[#allocation5 + $0xb0] sm:$0xff]   ;;  %v57_v23 = vld [vmem:[#allocation2] sm:$0xff]  ;;  %v60_v28 = vld [vmem:[#allocation2 + $0x14] sm:$0xf] }
  0x41   :  { %799 = vmatprep.subr.bf16.mxu0 %v1206_v7  ;;  %v1250_v21 = vld [vmem:[#allocation5 + $0x30] sm:$0xff]   ;;  %v991_v30 = vld [vmem:[#allocation5 + $0xb8] sm:$0xff]   ;;  %v996_v51 = vld [vmem:[#allocation7 + $0x40] sm:$0xff]  }
  0x42   :  { %v59_v24 = vld [vmem:[#allocation2 + $0xc] sm:$0xff]  ;;  %v58_v25 = vld [vmem:[#allocation2 + $0x8] sm:$0xf]  ;;  %v997_v52 = vld [vmem:[#allocation7 + $0x80] sm:$0xff]  }
  0x43   :  { %893 = vmatpush3.bf16.msra.mxu1 %v1209_v8  ;;  %v65_v26 = vcombine.low %v57_v23, %v59_v24  ;;  %v66_v27 = vcombine.high %v57_v23, %v59_v24  ;;  %v67_v29 = vcombine.low %v58_v25, %v60_v28  ;;  %v992_v33 = vld [vmem:[#allocation5 + $0x38] sm:$0xff]   ;;  %v998_v53 = vld [vmem:[#allocation7] sm:$0xff]   ;;  %v999_v54 = vld [vmem:[#allocation7 + $0x48] sm:$0xff]  }
  0x44   :  { %800 = vmatpush3.bf16.msra.mxu0 %v1213_v9  ;;  %894 = vmatprep.subr.bf16.mxu1 %v1121_v0  ;;  %v1000_v55 = vld [vmem:[#allocation7 + $0x88] sm:$0xff]   ;;  %v1002_v57 = vld [vmem:[#allocation7 + $0x50] sm:$0xff]   ;;  %v1005_v60 = vld [vmem:[#allocation7 + $0x58] sm:$0xff]  }
  0x45   :  { %801 = vmatprep.subr.bf16.mxu0 %v1216_v10  ;;  %v1259_v31 = vpack.c.bf16 %v65_v26, %v65_v26  ;;  %v1261_v32 = vpack.c.bf16 %v66_v27, %v66_v27  ;;  %v1265_v34 = vpack.c.bf16 %v67_v29, %v67_v29  ;;  %v1001_v56 = vld [vmem:[#allocation7 + $0x8] sm:$0xff]   ;;  %v1003_v58 = vld [vmem:[#allocation7 + $0x90] sm:$0xff]   ;;  %v1006_v61 = vld [vmem:[#allocation7 + $0x98] sm:$0xff]  }
  0x46   :  { %v1004_v59 = vld [vmem:[#allocation7 + $0x10] sm:$0xff]   ;;  %v1007_v62 = vld [vmem:[#allocation7 + $0x18] sm:$0xff]   ;;  %v1008_v63 = vld [vmem:[#allocation7 + $0x60] sm:$0xff]  }
  0x47   :  { %895 = vmatpush3.bf16.msra.mxu1 %v1219_v11  ;;  %v74_v35 = vunpack.c.l.bf16 %v1259_v31  ;;  %v75_v36 = vunpack.c.l.bf16 %v1261_v32  ;;  %v76_v37 = vunpack.c.l.bf16 %v1265_v34 }
  0x48   :  { %802 = vmatpush3.bf16.msra.mxu0 %v1223_v12  ;;  %896 = vmatprep.subr.bf16.mxu1 %v1121_v0 }
  0x49   :  { %803 = vmatprep.subr.bf16.mxu0 %v1226_v13  ;;  %v80_v38 = vcombine.low %v74_v35, %v75_v36  ;;  %v81_v39 = vcombine.high %v74_v35, %v75_v36  ;;  %v82_v40 = vcombine.high %v76_v37, %v76_v37  ;;  %v87_v41 = vsub.f32 %v58_v25, %v76_v37 }
  0x4b   :  { %897 = vmatpush3.bf16.msra.mxu1 %v1229_v14  ;;  %v86_v42 = vsub.f32 %v57_v23, %v80_v38  ;;  %v88_v43 = vsub.f32 %v59_v24, %v81_v39  ;;  %v89_v44 = vsub.f32 %v60_v28, %v82_v40 }
  0x4c   :  { %804 = vmatpush3.bf16.msra.mxu0 %v1233_v15  ;;  %898 = vmatprep.subr.bf16.mxu1 %v1121_v0 }
  0x4d   :  { %805 = vmatprep.subr.bf16.mxu0 %v1236_v16  ;;  %v95_v45 = vcombine.high %v86_v42, %v88_v43  ;;  %v94_v46 = vcombine.low %v86_v42, %v88_v43  ;;  %v96_v47 = vcombine.low %v87_v41, %v89_v44 }
  0x4f   :  { %899 = vmatpush3.bf16.msra.mxu1 %v1238_v17  ;;  %v101_v48 = vpack.c.bf16 %v95_v45, %v95_v45  ;;  %v100_v49 = vpack.c.bf16 %v94_v46, %v94_v46  ;;  %v102_v50 = vpack.c.bf16 %v96_v47, %v96_v47 }
  0x50   :  { %806 = vmatpush3.bf16.msra.mxu0 %v1241_v18  ;;  %900 = vmatprep.subr.bf16.mxu1 %v1121_v0 }
  0x51   :  { %807 = vmatprep.subr.bf16.mxu0 %v1245_v19  ;;  %375 = vmatprep.mubr.bf16.mxu0 %v101_v48 }
  0x53   :  { %901 = vmatpush3.bf16.msra.mxu1 %v1248_v20 }
  0x54   :  { %808 = vmatpush3.bf16.msra.mxu0 %v1250_v21  ;;  %902 = vmatprep.subr.bf16.mxu1 %v1121_v0 }
  0x55   :  { %809 = vmatprep.subr.bf16.mxu0 %v1253_v22 }
  0x57   :  { %903 = vmatpush3.bf16.msra.mxu1 %v991_v30 }
  0x58   :  { %810 = vmatpush3.bf16.msra.mxu0 %v992_v33  ;;  %908 = vmatprep.subr.bf16.mxu1 %v1121_v0 }
  0x59   :  { %826 = vmatprep.subr.bf16.mxu0 %v1189_v1  ;;  %v1009_v1 = vld [vmem:[#allocation7 + $0xa0] sm:$0xff]  }
  0x5a   :  { %905 = vmatmul.mubr.bf16.vlgmr.msra.gmra.mrb[0].mxu1 %v102_v50 }
  0x5b   :  { %376 = vmatmul.mubr.bf16.vlgmr.msra.gmra.mrb[0].mxu0 %v100_v49  ;;  %909 = vmatpush3.bf16.msra.mxu1 %v1191_v2  ;;  %v1010_v2 = vld [vmem:[#allocation7 + $0x20] sm:$0xff]  }
  0x5c   :  { %827 = vmatpush3.bf16.msra.mxu0 %v1194_v3  ;;  %910 = vmatprep.subr.bf16.mxu1 %v1121_v0  ;;  %v1011_v3 = vld [vmem:[#allocation7 + $0x68] sm:$0xff]  }
  0x5d   :  { %828 = vmatprep.subr.bf16.mxu0 %v1197_v4  ;;  %455 = vmatprep.mubr.bf16.mxu0 %v1261_v32  ;;  %v1012_v4 = vld [vmem:[#allocation7 + $0xa8] sm:$0xff]  }
  0x5e   :  { %924 = vmatprep.mubr.msk.bf16.mxu1 %vm1122_vm0, %v1121_v0 }
  0x5f   :  { %911 = vmatpush3.bf16.msra.mxu1 %v1201_v5  ;;  %v1013_v5 = vld [vmem:[#allocation7 + $0x28] sm:$0xff]  }
  0x60   :  { %829 = vmatpush3.bf16.msra.mxu0 %v1204_v6  ;;  %912 = vmatprep.subr.bf16.mxu1 %v1121_v0  ;;  %v1014_v6 = vld [vmem:[#allocation7 + $0x70] sm:$0xff]  }
  0x61   :  { %830 = vmatprep.subr.bf16.mxu0 %v1206_v7  ;;  %v1015_v7 = vld [vmem:[#allocation7 + $0xb0] sm:$0xff]  }
  0x63   :  { %913 = vmatpush3.bf16.msra.mxu1 %v1209_v8  ;;  %v1016_v8 = vld [vmem:[#allocation7 + $0x30] sm:$0xff]  }
  0x64   :  { %831 = vmatpush3.bf16.msra.mxu0 %v1213_v9  ;;  %914 = vmatprep.subr.bf16.mxu1 %v1121_v0  ;;  %v1017_v9 = vld [vmem:[#allocation7 + $0x78] sm:$0xff]  }
  0x65   :  { %832 = vmatprep.subr.bf16.mxu0 %v1216_v10  ;;  %v1018_v10 = vld [vmem:[#allocation7 + $0xb8] sm:$0xff]  }
  0x67   :  { %915 = vmatpush3.bf16.msra.mxu1 %v1219_v11  ;;  %v1019_v11 = vld [vmem:[#allocation7 + $0x38] sm:$0xff]  }
  0x68   :  { %833 = vmatpush3.bf16.msra.mxu0 %v1223_v12  ;;  %916 = vmatprep.subr.bf16.mxu1 %v1121_v0 }
  0x69   :  { %834 = vmatprep.subr.bf16.mxu0 %v1226_v13 }
  0x6b   :  { %917 = vmatpush3.bf16.msra.mxu1 %v1229_v14 }
  0x6c   :  { %835 = vmatpush3.bf16.msra.mxu0 %v1233_v15  ;;  %918 = vmatprep.subr.bf16.mxu1 %v1121_v0 }
  0x6d   :  { %836 = vmatprep.subr.bf16.mxu0 %v1236_v16 }
  0x6f   :  { %919 = vmatpush3.bf16.msra.mxu1 %v1238_v17 }
  0x70   :  { %837 = vmatpush3.bf16.msra.mxu0 %v1241_v18  ;;  %920 = vmatprep.subr.bf16.mxu1 %v1121_v0 }
  0x71   :  { %838 = vmatprep.subr.bf16.mxu0 %v1245_v19 }
  0x73   :  { %921 = vmatpush3.bf16.msra.mxu1 %v1248_v20 }
  0x74   :  { %839 = vmatpush3.bf16.msra.mxu0 %v1250_v21  ;;  %922 = vmatprep.subr.bf16.mxu1 %v1121_v0 }
  0x75   :  { %840 = vmatprep.subr.bf16.mxu0 %v1253_v22 }
  0x77   :  { %923 = vmatpush3.bf16.msra.mxu1 %v991_v30 }
  0x78   :  { %841 = vmatpush3.bf16.msra.mxu0 %v992_v33  ;;  %928 = vmatprep.subr.bf16.mxu1 %v1121_v0 }
  0x79   :  { %857 = vmatprep.subr.bf16.mxu0 %v996_v51 }
  0x7a   :  { %925 = vmatmul.mubr.bf16.vlgmr.msra.gmra.mrb[0].mxu1 %v1265_v34 }
  0x7b   :  { %456 = vmatmul.mubr.bf16.vlgmr.msra.gmra.mrb[4].mxu0 %v1259_v31  ;;  %929 = vmatpush3.bf16.msra.mxu1 %v997_v52 }
  0x7c   :  { %858 = vmatpush3.bf16.msra.mxu0 %v998_v53  ;;  %930 = vmatprep.subr.bf16.mxu1 %v1121_v0 }
  0x7d   :  { %859 = vmatprep.subr.bf16.mxu0 %v999_v54  ;;  %944 = vmatprep.mubr.msk.bf16.mxu1 %vm1122_vm0, %v1121_v0 }
  0x7e   :  { %679 = vmatprep.mubr.bf16.mxu0 %v1261_v32 }
  0x7f   :  { %931 = vmatpush3.bf16.msra.mxu1 %v1000_v55 }
  0x80   :  { %860 = vmatpush3.bf16.msra.mxu0 %v1001_v56  ;;  %932 = vmatprep.subr.bf16.mxu1 %v1121_v0 }
  0x81   :  { %861 = vmatprep.subr.bf16.mxu0 %v1002_v57 }
  0x83   :  { %933 = vmatpush3.bf16.msra.mxu1 %v1003_v58 }
  0x84   :  { %862 = vmatpush3.bf16.msra.mxu0 %v1004_v59  ;;  %934 = vmatprep.subr.bf16.mxu1 %v1121_v0 }
  0x85   :  { %863 = vmatprep.subr.bf16.mxu0 %v1005_v60 }
  0x87   :  { %935 = vmatpush3.bf16.msra.mxu1 %v1006_v61 }
  0x88   :  { %864 = vmatpush3.bf16.msra.mxu0 %v1007_v62  ;;  %936 = vmatprep.subr.bf16.mxu1 %v1121_v0 }
  0x89   :  { %865 = vmatprep.subr.bf16.mxu0 %v1008_v63 }
  0x8b   :  { %937 = vmatpush3.bf16.msra.mxu1 %v1009_v1 }
  0x8c   :  { %866 = vmatpush3.bf16.msra.mxu0 %v1010_v2  ;;  %938 = vmatprep.subr.bf16.mxu1 %v1121_v0 }
  0x8d   :  { %867 = vmatprep.subr.bf16.mxu0 %v1011_v3 }
  0x8f   :  { %939 = vmatpush3.bf16.msra.mxu1 %v1012_v4 }
  0x90   :  { %868 = vmatpush3.bf16.msra.mxu0 %v1013_v5  ;;  %940 = vmatprep.subr.bf16.mxu1 %v1121_v0 }
  0x91   :  { %869 = vmatprep.subr.bf16.mxu0 %v1014_v6 }
  0x93   :  { %941 = vmatpush3.bf16.msra.mxu1 %v1015_v7 }
  0x94   :  { %870 = vmatpush3.bf16.msra.mxu0 %v1016_v8  ;;  %942 = vmatprep.subr.bf16.mxu1 %v1121_v0 }
  0x95   :  { %871 = vmatprep.subr.bf16.mxu0 %v1017_v9 }
  0x97   :  { %943 = vmatpush3.bf16.msra.mxu1 %v1018_v10 }
  0x98   :  { %872 = vmatpush3.bf16.msra.mxu0 %v1019_v11 }
  0x9a   :  { %945 = vmatmul.mubr.bf16.vlgmr.msra.gmra.mrb[0].mxu1 %v1265_v34 }
  0x9b   :  { %680 = vmatmul.mubr.bf16.vlgmr.msra.gmra.mrb[8].mxu0 %v1259_v31 }
 0x12e   :  { %v811_v12 = vpop.f32.mrb[0].mxu0 }
 0x12f   :  { %v812_v13 = vpop.f32.mrb[1].mxu0 }
 0x130   :  { %v813_v14 = vadd.f32 %v812_v13, %v811_v12  ;;  %v814_v15 = vpop.f32.mrb[2].mxu0 }
 0x131   :  { %v815_v16 = vpop.f32.mrb[3].mxu0 }
 0x14e   :  { %v842_v17 = vpop.f32.mrb[4].mxu0 }
 0x14f   :  { %v843_v18 = vpop.f32.mrb[5].mxu0 }
 0x150   :  { %v844_v19 = vadd.f32 %v843_v18, %v842_v17  ;;  %v845_v20 = vpop.f32.mrb[6].mxu0 }
 0x151   :  { %v846_v21 = vpop.f32.mrb[7].mxu0 }
 0x152   :  { %v948_v22 = vadd.f32 %v844_v19, %v813_v14 }
 0x16d   :  { %v721_v23 = vpop.f32.mrb[0].mxu1 }
 0x16e   :  { %v873_v0 = vpop.f32.mrb[8].mxu0  ;;  %v946_v24 = vpop.f32.mrb[1].mxu1 }
 0x16f   :  { %v874_v25 = vpop.f32.mrb[9].mxu0  ;;  %v724_v27 = vpop.f32.mrb[2].mxu1 }
 0x170   :  { %v875_v26 = vadd.f32 %v874_v25, %v873_v0  ;;  %v876_v28 = vpop.f32.mrb[10].mxu0  ;;  %v947_v29 = vpop.f32.mrb[3].mxu1 }
 0x171   :  { %v877_v30 = vpop.f32.mrb[11].mxu0 }
 0x172   :  { %v949_v31 = vadd.f32 %v948_v22, %v875_v26 }
 0x174   :  { %v950_v32 = vadd.f32 %v949_v31, %v721_v23 }
 0x176   :  { %728 = vst [vmem:[#allocation8] sm:$0xff] %v950_v32 }
 0x177   :  { %733 = vsyncadd [#allocation4], 64  ;;  %s1123_s2 = smov [#allocation8]  }
 0x178   :  { %s734_s26 = sshll.u32 %s1123_s2, 4  ;;  %s735_s26 = int_to_ptr.vmem [resolvable:$true] %s734_s26 }
 0x179   :  { %s1086_s27 = scalar_lea.vmem %s735_s26, 64  ;;  %s1090_s28 = scalar_lea.vmem %s735_s26, 128 }
 0x17a   :  { %p1087_p10 = scmp.ne.s32.totalorder %s735_s26, %s1086_s27  ;;  %p1091_p11 = scmp.lt.s32.totalorder %s735_s26, %s735_s26 }
 0x17b   :  { %p1092_p12 = scmp.lt.s32.totalorder %s1090_s28, %s1086_s27 }
 0x17d   :  { %p1093_p13 = por %p1092_p12, %p1091_p11 }
 0x17f   :  { %p1094_p0 = pnand %p1093_p13, %p1087_p10 }
 0x181   :  { %1097 = shalt.err (!%p1094_p0)
}
 0x182   :  { %s1098_s4 = scalar_lea.hbm %s1337_s3, 64 }
 0x183   :  { %p1099_p1 = scmp.ne.s32.totalorder %s1337_s3, %s1098_s4  ;;  %p1102_p2 = scmp.lt.u32.totalorder %s1098_s4, %s1337_s3 }
 0x185   :  { %p1104_p3 = pnand %p1102_p2, %p1099_p1 }
 0x187   :  { %1107 = shalt.err (!%p1104_p3)
}
 0x188   :  { %740 = dma.vmem_to_hbm [thread:$0]  %s735_s26, 64, %s1337_s3, [#allocation4], %s1115_s22, %s1115_s22, %s1116_s23  }
 0x189   :  { %1112 = dma.done.wait [#allocation4], 128  }
 0x18a   :  { %1113 = vsyncadd [#allocation4], 4294967168 }
 0x18b   :  { %744 = vsyncpa [#allocation3], 1 }
 0x18c   :  { %745 = vsyncpa [#allocation6], 1 }
 0x18d   :  { %746 = vsyncpa [#allocation4], 1 }

</bundles_post_ra>
